<compile_context>
chip_gen: v7x
topology: tpu7x:2x2x1
jax: 0.10.0
libtpu: 0.0.40
codegen_flags: <defaults>
</compile_context>

<pallas_src>
import numpy as np
import jax
import jax.numpy as jnp
from jax import lax
from jax.experimental import pallas as pl
from jax.experimental.pallas import tpu as pltpu


# --------------------------------------------------------------------------- #
# Kernel
# --------------------------------------------------------------------------- #
def _prompt_add_kernel(x_ref, prompt_ref, o_ref):
    # x_ref / o_ref: (bn, ft) lane-dense slabs of the flattened (N, C*H*W)
    # images; prompt_ref: (1, ft) slab of the flattened prompt plane.
    # Single unmasked elementwise add; the prompt broadcasts across sublanes.
    o_ref[...] = x_ref[...] + prompt_ref[...]


# --------------------------------------------------------------------------- #
# Tiling / VMEM policy (generation aware)
# --------------------------------------------------------------------------- #
def _cdiv(a, b):
    return -(-a // b)


def _vmem_budget():
    """Return (vmem_limit_bytes, per-block byte budget)."""
    try:
        info = pltpu.get_tpu_info()
        cap = int(getattr(info, "vmem_capacity_bytes", 0) or 0)
    except Exception:
        cap = 0
    if cap <= 0:
        cap = 64 << 20  # conservative fallback: v7x per-TC physical VMEM
    # Explicit scoped-VMEM limit: room for ~8 MiB blocks on every generation
    # while keeping >= 16 MiB headroom below physical VMEM (matters on v7x).
    vmem_limit = int(max(16 << 20, min(cap - (16 << 20), 48 << 20)))
    # in + out blocks are double-buffered (4 buffers) + 1 prompt tile + slack.
    per_block = int(max(1 << 20, min(8 << 20, (vmem_limit - (2 << 20)) // 5)))
    return vmem_limit, per_block


def _choose_tiling(N, F, itemsize, per_block):
    """Pick (bn, ft): batch rows and lane-dense F chunk per block.

    Invariants: bn == N or bn % 8 == 0;  ft == F or ft % 128 == 0;  a (bn, ft)
    block never exceeds `per_block` bytes, so the double-buffered in/out blocks
    plus the prompt tile fit the explicit vmem limit on v5e / v6e / v7x."""
    min_rows = N if N < 8 else 8

    # ---- lane (F) chunk ------------------------------------------------------
    ft = F
    if F > 128 and min_rows * F * itemsize > per_block:
        total_lanes = _cdiv(F, 128)
        target = max(1, per_block // (min_rows * 128 * itemsize))
        target = min(target, total_lanes)
        if F % 128 == 0:
            # Prefer a divisor of (F // 128): every tile stays fully lane dense.
            best, d = 1, 1
            while d * d <= total_lanes:
                if total_lanes % d == 0:
                    if d <= target:
                        best = max(best, d)
                    if total_lanes // d <= target:
                        best = max(best, total_lanes // d)
                d += 1
            target = best
        ft = target * 128

    # ---- batch (sublane) rows ------------------------------------------------
    row_bytes = ft * itemsize
    if N < 8 or N * row_bytes <= per_block:
        bn = N
    else:
        bn = (per_block // row_bytes) // 8 * 8
        bn = max(8, min(bn, (N // 8) * 8))

    # ---- v7x megacore: guarantee >= 2 parallel grid steps where cheap --------
    if _cdiv(N, bn) * _cdiv(F, ft) < 2:
        if ft % 256 == 0:
            ft //= 2
        elif N >= 16 and (N // 2) % 8 == 0:
            bn = N // 2
    return bn, ft


# --------------------------------------------------------------------------- #
# Forward impl
# --------------------------------------------------------------------------- #
def _random_patch_prompter_impl(x, patch, origin_h, origin_w,
                                prompt_buffer_count):
    """x: (N, 3, H, W), patch: (1, 3, P, P) -> x + prompt, shape (N, 3, H, W)."""
    N, C, H, W = x.shape

    # Fold the (traced) random origin into a full (C, H, W) prompt plane once,
    # amortized over the whole batch; the kernel stays a pure lane-dense add.
    prompt_plane = lax.dynamic_update_slice(
        jnp.zeros((C, H, W), x.dtype),
        patch[0].astype(x.dtype),
        (jnp.int32(0),
         jnp.asarray(origin_h, jnp.int32),
         jnp.asarray(origin_w, jnp.int32)),
    )

    F = C * H * W
    x_flat = x.reshape(N, F)
    prompt_flat = prompt_plane.reshape(1, F)

    itemsize = x.dtype.itemsize
    vmem_limit, per_block = _vmem_budget()
    bn, ft = _choose_tiling(N, F, itemsize, per_block)

    nf = _cdiv(F, ft)
    nb = _cdiv(N, bn)
    # F axis is OUTER so the (tiny) prompt tile only changes nf times over the
    # whole grid, even when single-buffered.
    grid = (nf, nb)

    prompt_spec_kwargs = {}
    if prompt_buffer_count is not None:
        # Constant across the batch axis -> its second pipeline buffer is
        # wasted VMEM; single-buffer it and spend the savings on bigger blocks.
        prompt_spec_kwargs["pipeline_mode"] = pl.Buffered(prompt_buffer_count)

    cost = pl.CostEstimate(
        flops=N * F,
        bytes_accessed=(2 * N * F + F) * itemsize,
        transcendentals=0,
    )

    out_flat = pl.pallas_call(
        _prompt_add_kernel,
        out_shape=jax.ShapeDtypeStruct((N, F), x.dtype),
        grid=grid,
        in_specs=[
            pl.BlockSpec((bn, ft), lambda j, i: (i, j)),
            pl.BlockSpec((1, ft), lambda j, i: (0, j), **prompt_spec_kwargs),
        ],
        out_specs=pl.BlockSpec((bn, ft), lambda j, i: (i, j)),
        compiler_params=pltpu.CompilerParams(
            dimension_semantics=("parallel", "parallel"),
            vmem_limit_bytes=vmem_limit,
        ),
        cost_estimate=cost,
    )(x_flat, prompt_flat)

    # TODO(synk): if the call site can donate x (jit donate_argnums), switch to
    # an aliased kernel (input_output_aliases={0: 0}) that only touches the
    # PxP window -> ~(H*W)/(P*P)x less HBM traffic; without donation the
    # defensive copy would cost the same as this full-plane add.
    return out_flat.reshape(N, C, H, W)


def _make_fn(prompt_buffer_count):
    @jax.jit
    def fn(x, patch, origin_h, origin_w):
        return _random_patch_prompter_impl(x, patch, origin_h, origin_w,
                                           prompt_buffer_count)
    return fn


_ACTIVE_FN = None


def random_patch_prompter(x, patch, origin_h, origin_w):
    """Public entry point. Prefers a single-buffered prompt tile; falls back to
    default double-buffering if this jax/Mosaic build rejects pipeline_mode."""
    global _ACTIVE_FN
    if _ACTIVE_FN is not None:
        return _ACTIVE_FN(x, patch, origin_h, origin_w)
    last_err = None
    for buf_count in (1, None):
        fn = _make_fn(buf_count)
        try:
            out = fn(x, patch, origin_h, origin_w)
        except Exception as e:  # lowering rejection -> fall back, else re-raise
            last_err = e
            continue
        _ACTIVE_FN = fn
        return out
    raise last_err


# --------------------------------------------------------------------------- #
# Pure-JAX reference (mirrors the torch code) + self-test
# --------------------------------------------------------------------------- #
def _reference(x, patch, origin_h, origin_w):
    P = patch.shape[2]
    prompt = jnp.zeros(x.shape, x.dtype)
    prompt = prompt.at[:, :, origin_h:origin_h + P,
                       origin_w:origin_w + P].set(patch)
    return x + prompt


if __name__ == "__main__":
    # Small deterministic setup consistent with the module:
    # args.image_size = 16, args.prompt_size = 4, batch = 2, channels = 3.
    image_size = 16
    prompt_size = 4
    batch = 2

    key = jax.random.PRNGKey(0)
    k_patch, k_x = jax.random.split(key)

    # Deterministic "parameter" init (torch.randn(1, 3, P, P) analogue).
    patch = jax.random.normal(k_patch, (1, 3, prompt_size, prompt_size),
                              dtype=jnp.float32)
    x = jax.random.normal(k_x, (batch, 3, image_size, image_size),
                          dtype=jnp.float32)

    # Host-side random origin (np.random.randint analogue), deterministically
    # seeded.  Preserve the original module's cross-axis quirk: the draw
    # against x.shape[3] is applied to dim 2 and vice versa.
    rng = np.random.RandomState(0)
    origin_x = int(rng.randint(low=0, high=x.shape[3] - prompt_size))  # -> dim 2
    origin_y = int(rng.randint(low=0, high=x.shape[2] - prompt_size))  # -> dim 3

    out = jax.block_until_ready(random_patch_prompter(x, patch,
                                                      origin_x, origin_y))
    ref = _reference(x, patch, origin_x, origin_y)
    assert out.shape == x.shape and out.dtype == x.dtype
    np.testing.assert_allclose(np.asarray(out), np.asarray(ref),
                               rtol=1e-6, atol=1e-6)

    # A second origin reuses the same compiled kernel (origin is a traced arg).
    origin_x2 = int(rng.randint(low=0, high=x.shape[3] - prompt_size))
    origin_y2 = int(rng.randint(low=0, high=x.shape[2] - prompt_size))
    out2 = jax.block_until_ready(
        random_patch_prompter(x, patch, origin_x2, origin_y2))
    np.testing.assert_allclose(
        np.asarray(out2),
        np.asarray(_reference(x, patch, origin_x2, origin_y2)),
        rtol=1e-6, atol=1e-6)

    print("KERNEL_OK")
</pallas_src>

<mosaic_0001>
module attributes {stable_mosaic.version = 11 : i64} {
  func.func @_prompt_add_kernel(%arg0: i32, %arg1: i32, %arg2: memref<2x384xf32, #tpu.memory_space<vmem>>, %arg3: memref<1x384xf32, #tpu.memory_space<vmem>>, %arg4: memref<2x384xf32, #tpu.memory_space<vmem>>) attributes {dimension_semantics = [#tpu.dimension_semantics<parallel>, #tpu.dimension_semantics<parallel>], iteration_bounds = array<i64: 2, 1>, scalar_prefetch = 0 : i64, scratch_operands = 0 : i64, tpu.core_type = #tpu.core_type<tc>, window_params = [{transform_indices = @transform_0, window_bounds = array<i64: 2, 384>}, {pipeline_mode = #tpu.pipeline_mode<synchronous>, transform_indices = @transform_1, window_bounds = array<i64: 1, 384>}, {transform_indices = @transform_2, window_bounds = array<i64: 2, 384>}]} {
    %c0 = arith.constant 0 : index
    %c0_0 = arith.constant 0 : index
    %0 = vector.load %arg2[%c0, %c0_0] : memref<2x384xf32, #tpu.memory_space<vmem>>, vector<2x384xf32>
    %c0_1 = arith.constant 0 : index
    %c0_2 = arith.constant 0 : index
    %1 = vector.load %arg3[%c0_1, %c0_2] : memref<1x384xf32, #tpu.memory_space<vmem>>, vector<1x384xf32>
    %2 = vector.broadcast %1 : vector<1x384xf32> to vector<2x384xf32>
    %3 = arith.addf %0, %2 : vector<2x384xf32>
    %c0_3 = arith.constant 0 : index
    %c0_4 = arith.constant 0 : index
    %4 = vector.load %arg4[%c0_3, %c0_4] : memref<2x384xf32, #tpu.memory_space<vmem>>, vector<2x384xf32>
    tpu.vector_store %arg4[%c0_3, %c0_4], %3 {strides = array<i32>} : memref<2x384xf32, #tpu.memory_space<vmem>>, vector<2x384xf32>,
    return
  }
  func.func @transform_0(%arg0: i32, %arg1: i32) -> (i32, i32) {
    %c0_i32 = arith.constant 0 : i32
    return %arg1, %arg0 : i32, i32
  }
  func.func @transform_1(%arg0: i32, %arg1: i32) -> (i32, i32) {
    %c0_i32 = arith.constant 0 : i32
    %c0_i32_0 = arith.constant 0 : i32
    return %c0_i32, %arg0 : i32, i32
  }
  func.func @transform_2(%arg0: i32, %arg1: i32) -> (i32, i32) {
    %c0_i32 = arith.constant 0 : i32
    return %arg1, %arg0 : i32, i32
  }
}

module attributes {stable_mosaic.version = 11 : i64} {
  func.func @_prompt_add_kernel(%arg0: i32, %arg1: i32, %arg2: memref<2x384xf32, #tpu.memory_space<vmem>>, %arg3: memref<1x384xf32, #tpu.memory_space<vmem>>, %arg4: memref<2x384xf32, #tpu.memory_space<vmem>>) attributes {dimension_semantics = [#tpu.dimension_semantics<parallel>, #tpu.dimension_semantics<parallel>], iteration_bounds = array<i64: 2, 1>, scalar_prefetch = 0 : i64, scratch_operands = 0 : i64, tpu.core_type = #tpu.core_type<tc>, window_params = [{transform_indices = @transform_0, window_bounds = array<i64: 2, 384>}, {transform_indices = @transform_1, window_bounds = array<i64: 1, 384>}, {transform_indices = @transform_2, window_bounds = array<i64: 2, 384>}]} {
    %c0 = arith.constant 0 : index
    %c0_0 = arith.constant 0 : index
    %0 = vector.load %arg2[%c0, %c0_0] : memref<2x384xf32, #tpu.memory_space<vmem>>, vector<2x384xf32>
    %c0_1 = arith.constant 0 : index
    %c0_2 = arith.constant 0 : index
    %1 = vector.load %arg3[%c0_1, %c0_2] : memref<1x384xf32, #tpu.memory_space<vmem>>, vector<1x384xf32>
    %2 = vector.broadcast %1 : vector<1x384xf32> to vector<2x384xf32>
    %3 = arith.addf %0, %2 : vector<2x384xf32>
    %c0_3 = arith.constant 0 : index
    %c0_4 = arith.constant 0 : index
    %4 = vector.load %arg4[%c0_3, %c0_4] : memref<2x384xf32, #tpu.memory_space<vmem>>, vector<2x384xf32>
    tpu.vector_store %arg4[%c0_3, %c0_4], %3 {strides = array<i32>} : memref<2x384xf32, #tpu.memory_space<vmem>>, vector<2x384xf32>,
    return
  }
  func.func @transform_0(%arg0: i32, %arg1: i32) -> (i32, i32) {
    %c0_i32 = arith.constant 0 : i32
    return %arg1, %arg0 : i32, i32
  }
  func.func @transform_1(%arg0: i32, %arg1: i32) -> (i32, i32) {
    %c0_i32 = arith.constant 0 : i32
    %c0_i32_0 = arith.constant 0 : i32
    return %c0_i32, %arg0 : i32, i32
  }
  func.func @transform_2(%arg0: i32, %arg1: i32) -> (i32, i32) {
    %c0_i32 = arith.constant 0 : i32
    return %arg1, %arg0 : i32, i32
  }
}

</mosaic_0001>

<bundles_post_ra>
// kernel: fn.1
= control target key start
LH: loop header
LB: loop body
LE: loop exit
PB: predicated region body
PF: predicated region fallthrough
CT: control target
= control target key end

     0   :  { %s409_s9 = smov 0   ;;  %s411_s10 = smov 0   ;;  %s445_s0 = inlined_call_operand.vmem [shape: f32[2,768], index: 0, kind: input, shape index: {}]   ;;  %s446_s1 = inlined_call_operand.vmem [shape: f32[1,768], index: 1, kind: input, shape index: {}]   ;;  %s447_s2 = inlined_call_operand.vmem [shape: f32[2,768], index: 2, kind: output, shape index: {}]  }
   0x1   :  { %s413_s11 = smov 0  }
   0x2 LB: > { %s24_s12 = sadd.s32 1, %s387_s10  ;;  %p339_p0 = scmp.ge.s32.totalorder %s391_s11, 1  ;;  %s391_s11 = sphi %s413_s11, %s12_s11   ;;  %s387_s10 = sphi %s411_s10, %s449_s10   ;;  %s383_s9 = sphi %s409_s9, %s448_s9  }
   0x3   : > { %p26_p1 = scmp.ge.s32.totalorder %s24_s12, 2  ;;  %p143_p2 = scmp.lt.s32.totalorder %s391_s11, 3 }
   0x5   : > { %s451_s12 = smov (%p26_p1, %s24_s12), 0  ;;  %p144_p3 = pnand %p339_p0, %p143_p2 }
   0x6   : > { %s177_s13 = smul.u32 (!%p144_p3), 3, %s383_s9  ;;  %v205_v0 = vlaneseq (!%p144_p3)  ;;  %v393_v1 = vmov (!%p144_p3), 1983009808  }
   0x7   : > { %147 = sbr.rel (%p144_p3) target bundleno = 28 (0x1c), region = 28  ;;  %v219_v2 = vunpack.c.l.s4 (!%p144_p3), %v393_v1 }
   0x8   : > { %p180_p4 = scmp.lt.s32.totalorder (!%p144_p3), %s177_s13, 5  ;;  %v206_v3 = vshrl.u32 (!%p144_p3), %v205_v0, 7 }
   0x9   : > { %v220_v4 = vunpack.c.0.s8 (!%p144_p3), %v219_v2 }
   0xa   : > { %v207_v5 = vsub.s32 (!%p144_p3), 0, %v206_v3  ;;  %v211_v6 = vsub.s32 (!%p144_p3), 1, %v206_v3  ;;  %v215_v7 = vsub.s32 (!%p144_p3), 2, %v206_v3 }
   0xb   : > { %v223_v8 = vsub.s32 (!%p144_p3), %v220_v4, %v206_v3 }
   0xe   : > { %s453_s13 = smov (!%p180_p4, %s177_s13), 5 }
   0xf   : > { %s190_s16 = scalar_lea.vmem %s446_s1, %s453_s13  ;;  %s340_s17 = sshll.u32 %s453_s13, 1 }
  0x10   : > { %v203_v9 = vld [vmem:[%s190_s16] sm:$0x7]  ;;  %s185_s20 = scalar_lea.vmem %s445_s0, %s340_s17  ;;  %s200_s23 = scalar_lea.vmem %s447_s2, %s340_s17 }
  0x11   : > { %v208_v10 = vrot.slane %v203_v9, %v207_v5  ;;  %v212_v11 = vrot.slane %v203_v9, %v211_v6  ;;  %v216_v12 = vrot.slane %v203_v9, %v215_v7  ;;  %v202_v16 = vld [vmem:[%s185_s20] sm:$0x3f] }
  0x13   : > { %v217_v13 = vcombine.low %v208_v10, %v212_v11  ;;  %v231_v14 = vrot.slane %v216_v12, %v223_v8 }
  0x15   : > { %v224_v15 = vrot.slane %v217_v13, %v223_v8 }
  0x17   : > { %v232_v17 = vcombine.low %v224_v15, %v231_v14 }
  0x19   : > { %v234_v18 = vadd.f32 %v232_v17, %v202_v16 }
  0x1b   : > { %235 = vst [vmem:[%s200_s23] sm:$0x3f] %v234_v18 }
  0x1c PF: > { %s12_s11 = sadd.s32 1, %s391_s11   ;;  %s448_s9 = smov %s387_s10 }
  0x1d   : > { %p9_p5 = scmp.ge.s32.totalorder %s12_s11, 4   ;;  %s449_s10 = smov %s451_s12 }
  0x1f   :  { %11 = sbr.rel (!%p9_p5) target bundleno = 2 (0x2), region = 61 }

// kernel: fn.1
= control target key start
LH: loop header
LB: loop body
LE: loop exit
PB: predicated region body
PF: predicated region fallthrough
CT: control target
= control target key end

     0   :  { %s406_s9 = smov 0   ;;  %s408_s10 = smov 0   ;;  %s442_s0 = inlined_call_operand.vmem [shape: f32[2,768], index: 0, kind: input, shape index: {}]   ;;  %s443_s1 = inlined_call_operand.vmem [shape: f32[1,768], index: 1, kind: input, shape index: {}]   ;;  %s444_s2 = inlined_call_operand.vmem [shape: f32[2,768], index: 2, kind: output, shape index: {}]  }
   0x1   :  { %s410_s11 = smov 0  }
   0x2 LB: > { %s24_s12 = sadd.s32 1, %s384_s10  ;;  %p336_p0 = scmp.ge.s32.totalorder %s388_s11, 1  ;;  %s388_s11 = sphi %s410_s11, %s12_s11   ;;  %s384_s10 = sphi %s408_s10, %s446_s10   ;;  %s380_s9 = sphi %s406_s9, %s445_s9  }
   0x3   : > { %p26_p1 = scmp.ge.s32.totalorder %s24_s12, 2  ;;  %p143_p2 = scmp.lt.s32.totalorder %s388_s11, 3 }
   0x5   : > { %s448_s12 = smov (%p26_p1, %s24_s12), 0  ;;  %p144_p3 = pnand %p336_p0, %p143_p2 }
   0x6   : > { %s177_s13 = smul.u32 (!%p144_p3), 3, %s380_s9  ;;  %v205_v0 = vlaneseq (!%p144_p3)  ;;  %v390_v1 = vmov (!%p144_p3), 1983009808  }
   0x7   : > { %147 = sbr.rel (%p144_p3) target bundleno = 28 (0x1c), region = 28  ;;  %v219_v2 = vunpack.c.l.s4 (!%p144_p3), %v390_v1 }
   0x8   : > { %p180_p4 = scmp.lt.s32.totalorder (!%p144_p3), %s177_s13, 5  ;;  %v206_v3 = vshrl.u32 (!%p144_p3), %v205_v0, 7 }
   0x9   : > { %v220_v4 = vunpack.c.0.s8 (!%p144_p3), %v219_v2 }
   0xa   : > { %v207_v5 = vsub.s32 (!%p144_p3), 0, %v206_v3  ;;  %v211_v6 = vsub.s32 (!%p144_p3), 1, %v206_v3  ;;  %v215_v7 = vsub.s32 (!%p144_p3), 2, %v206_v3 }
   0xb   : > { %v223_v8 = vsub.s32 (!%p144_p3), %v220_v4, %v206_v3 }
   0xe   : > { %s450_s13 = smov (!%p180_p4, %s177_s13), 5 }
   0xf   : > { %s190_s16 = scalar_lea.vmem %s443_s1, %s450_s13  ;;  %s337_s17 = sshll.u32 %s450_s13, 1 }
  0x10   : > { %v203_v9 = vld [vmem:[%s190_s16] sm:$0x7]  ;;  %s185_s20 = scalar_lea.vmem %s442_s0, %s337_s17  ;;  %s200_s23 = scalar_lea.vmem %s444_s2, %s337_s17 }
  0x11   : > { %v208_v10 = vrot.slane %v203_v9, %v207_v5  ;;  %v212_v11 = vrot.slane %v203_v9, %v211_v6  ;;  %v216_v12 = vrot.slane %v203_v9, %v215_v7  ;;  %v202_v16 = vld [vmem:[%s185_s20] sm:$0x3f] }
  0x13   : > { %v217_v13 = vcombine.low %v208_v10, %v212_v11  ;;  %v231_v14 = vrot.slane %v216_v12, %v223_v8 }
  0x15   : > { %v224_v15 = vrot.slane %v217_v13, %v223_v8 }
  0x17   : > { %v232_v17 = vcombine.low %v224_v15, %v231_v14 }
  0x19   : > { %v234_v18 = vadd.f32 %v232_v17, %v202_v16 }
  0x1b   : > { %235 = vst [vmem:[%s200_s23] sm:$0x3f] %v234_v18 }
  0x1c PF: > { %s12_s11 = sadd.s32 1, %s388_s11   ;;  %s445_s9 = smov %s384_s10 }
  0x1d   : > { %p9_p5 = scmp.ge.s32.totalorder %s12_s11, 4   ;;  %s446_s10 = smov %s448_s12 }
  0x1f   :  { %11 = sbr.rel (!%p9_p5) target bundleno = 2 (0x2), region = 61 }

</bundles_post_ra>
